<compile_context>
chip_gen: v6e
topology: v6e:2x2x1
jax: 0.10.0
libtpu: 0.0.40
codegen_flags: <defaults>
</compile_context>

<pallas_src>
import functools

import jax
import jax.numpy as jnp
from jax import lax
from jax.experimental import pallas as pl
from jax.experimental.pallas import tpu as pltpu


def _layernorm_kernel(x_ref, g_ref, o_ref, *, eps):
    # x_ref: (bn, C, t_rows, 128).  Channel reduction over axis=1, a leading
    # non-minor axis, so every (t_rows, 128) slab is fully lane/sublane dense
    # for any C and the reduce never touches the XLU.  Stores are lane-dense.
    x = x_ref[...].astype(jnp.float32)
    mean = jnp.mean(x, axis=1, keepdims=True)
    centered = x - mean
    var = jnp.mean(centered * centered, axis=1, keepdims=True)  # unbiased=False
    g = g_ref[...].astype(jnp.float32)                          # (1, C, 1, 1) -> broadcast
    o_ref[...] = (centered * lax.rsqrt(var + eps) * g).astype(o_ref.dtype)


def _vmem_budgets():
    """Generation-aware (vmem_limit_bytes, per-step VMEM footprint budget)."""
    try:
        cap = int(pltpu.get_tpu_info().vmem_capacity_bytes)
    except Exception:
        cap = 64 * 1024 * 1024           # conservative fallback: v7x per-TC VMEM
    if cap >= 100 * 1024 * 1024:         # v5e / v6e: 128 MiB physical VMEM
        return 96 * 1024 * 1024, 40 * 1024 * 1024
    # v7x: only 64 MiB per TensorCore -> keep headroom so double-buffering survives.
    return 48 * 1024 * 1024, 20 * 1024 * 1024


def _choose_tiles(n, c, rows, dtype_bytes, footprint_budget):
    """Pick (bn, t_rows) so the per-step VMEM footprint stays within budget.

    Footprint per block element: double-buffered input + output copies
    ((2 + 2) * dtype_bytes) plus ~12 B of f32 temporaries (x, centered, y)
    materialized inside the kernel.
    """
    per_elem = 4 * dtype_bytes + 12
    max_elems = max(footprint_budget // per_elem, c * 8 * 128)
    lane_row = c * 128                    # one 128-lane spatial row across all channels

    t_rows = max(1, max_elems // lane_row)
    if t_rows >= rows:
        t_rows = rows
        # Spatial extent is small: group batch elements per grid step to
        # amortize the fixed per-step overhead and lengthen DMAs.
        bn = min(n, max(1, max_elems // (lane_row * rows)))
        while n % bn:                     # keep leading-axis blocks exact
            bn -= 1
    else:
        t_rows = max(8, (t_rows // 8) * 8)   # sublane-axis tile: multiple of 8
        bn = 1

    # Guarantee >= 2 grid blocks when the problem allows it: v7x shards
    # "parallel" axes across its 2 TensorCores, and a single-block grid would
    # idle one of them (and disable any in/out DMA overlap everywhere).
    def n_blocks(bn_, tr_):
        return pl.cdiv(n, bn_) * pl.cdiv(rows, tr_)

    if n_blocks(bn, t_rows) < 2:
        if n >= 2:
            bn = max(1, n // 2)
            while n % bn:
                bn -= 1
        elif rows >= 16:
            t_rows = max(8, ((rows // 2) // 8) * 8)
    return bn, t_rows


def layer_norm(x_nchw, g):
    """x_nchw: (N, C, H, W); g: (1, C, 1, 1). Returns (N, C, H, W)."""
    N, C, H, W = x_nchw.shape
    HW = H * W
    eps = 1e-5 if x_nchw.dtype == jnp.float32 else 1e-3
    dtype_bytes = jnp.dtype(x_nchw.dtype).itemsize

    # Lane-dense 4-D layout: (N, C, rows, 128).  Only free reshapes, plus a
    # spatial zero-pad when HW is not a multiple of 128 (padded lanes compute
    # harmless values and are sliced off afterwards; the reduction is over C,
    # so padding never contaminates real outputs).
    rows = pl.cdiv(HW, 128)
    HW_pad = rows * 128
    x3 = x_nchw.reshape(N, C, HW)
    if HW_pad != HW:
        x3 = jnp.pad(x3, ((0, 0), (0, 0), (0, HW_pad - HW)))
    x4 = x3.reshape(N, C, rows, 128)
    g4 = g.reshape(1, C, 1, 1)

    vmem_limit, footprint_budget = _vmem_budgets()
    bn, t_rows = _choose_tiles(N, C, rows, dtype_bytes, footprint_budget)
    grid = (pl.cdiv(N, bn), pl.cdiv(rows, t_rows))

    cost = pl.CostEstimate(
        flops=8 * N * C * HW,
        transcendentals=N * HW,
        bytes_accessed=2 * N * C * HW * dtype_bytes + C * dtype_bytes,
    )

    # TODO(synk): if profiling on v7x shows exposed input DMA, add
    # pipeline_mode=pl.Buffered(3) to the input BlockSpec (headroom exists).
    out4 = pl.pallas_call(
        functools.partial(_layernorm_kernel, eps=eps),
        out_shape=jax.ShapeDtypeStruct((N, C, rows, 128), x_nchw.dtype),
        grid_spec=pltpu.PrefetchScalarGridSpec(
            num_scalar_prefetch=0,
            grid=grid,
            in_specs=[
                pl.BlockSpec((bn, C, t_rows, 128), lambda i, j: (i, 0, j, 0)),
                pl.BlockSpec((1, C, 1, 1), lambda i, j: (0, 0, 0, 0)),  # resident gamma
            ],
            out_specs=pl.BlockSpec((bn, C, t_rows, 128), lambda i, j: (i, 0, j, 0)),
        ),
        compiler_params=pltpu.CompilerParams(
            dimension_semantics=("parallel", "parallel"),
            vmem_limit_bytes=vmem_limit,
        ),
        cost_estimate=cost,
    )(x4, g4)

    out3 = out4.reshape(N, C, HW_pad)
    if HW_pad != HW:
        out3 = out3[:, :, :HW]
    return out3.reshape(N, C, H, W)


def _reference(x, g):
    eps = 1e-5 if x.dtype == jnp.float32 else 1e-3
    mean = jnp.mean(x, axis=1, keepdims=True)
    var = jnp.mean((x - mean) ** 2, axis=1, keepdims=True)
    return (x - mean) * lax.rsqrt(var + eps) * g


if __name__ == "__main__":
    key = jax.random.PRNGKey(0)
    N, C, H, W = 2, 4, 16, 16
    x = jax.random.normal(key, (N, C, H, W), dtype=jnp.float32)
    # Deterministic parameter init, matching nn.Parameter(torch.ones(1, dim, 1, 1)).
    g = jnp.ones((1, C, 1, 1), dtype=jnp.float32)

    out = layer_norm(x, g)
    out = jax.block_until_ready(out)

    ref = _reference(x, g)
    assert out.shape == (N, C, H, W)
    assert jnp.allclose(out, ref, atol=1e-5, rtol=1e-5), "mismatch vs reference"

    print("KERNEL_OK")
</pallas_src>

<mosaic_0001>
module attributes {stable_mosaic.version = 11 : i64} {
  func.func @_layernorm_kernel(%arg0: i32, %arg1: i32, %arg2: memref<1x4x2x128xf32, #tpu.memory_space<vmem>>, %arg3: memref<1x4x1x1xf32, #tpu.memory_space<vmem>>, %arg4: memref<1x4x2x128xf32, #tpu.memory_space<vmem>>) attributes {dimension_semantics = [#tpu.dimension_semantics<parallel>, #tpu.dimension_semantics<parallel>], iteration_bounds = array<i64: 2, 1>, scalar_prefetch = 0 : i64, scratch_operands = 0 : i64, tpu.core_type = #tpu.core_type<tc>, window_params = [{transform_indices = @transform_0, window_bounds = array<i64: 1, 4, 2, 128>}, {pipeline_mode = #tpu.pipeline_mode<synchronous>, transform_indices = @transform_1, window_bounds = array<i64: 1, 4, 1, 1>}, {transform_indices = @transform_2, window_bounds = array<i64: 1, 4, 2, 128>}]} {
    %c0 = arith.constant 0 : index
    %c0_0 = arith.constant 0 : index
    %c0_1 = arith.constant 0 : index
    %c0_2 = arith.constant 0 : index
    %0 = vector.load %arg2[%c0, %c0_0, %c0_1, %c0_2] : memref<1x4x2x128xf32, #tpu.memory_space<vmem>>, vector<1x4x2x128xf32>
    %cst = arith.constant dense<0.000000e+00> : vector<1x2x128xf32>
    %1 = vector.multi_reduction <add>, %0, %cst [1] : vector<1x4x2x128xf32> to vector<1x2x128xf32>
    %2 = vector.shape_cast %1 : vector<1x2x128xf32> to vector<1x1x2x128xf32>
    %cst_3 = arith.constant 4.000000e+00 : f32
    %3 = vector.broadcast %cst_3 : f32 to vector<1x1x2x128xf32>
    %4 = arith.divf %2, %3 : vector<1x1x2x128xf32>
    %5 = vector.broadcast %4 : vector<1x1x2x128xf32> to vector<1x4x2x128xf32>
    %6 = arith.subf %0, %5 : vector<1x4x2x128xf32>
    %7 = arith.mulf %6, %6 : vector<1x4x2x128xf32>
    %cst_4 = arith.constant dense<0.000000e+00> : vector<1x2x128xf32>
    %8 = vector.multi_reduction <add>, %7, %cst_4 [1] : vector<1x4x2x128xf32> to vector<1x2x128xf32>
    %9 = vector.shape_cast %8 : vector<1x2x128xf32> to vector<1x1x2x128xf32>
    %cst_5 = arith.constant 4.000000e+00 : f32
    %10 = vector.broadcast %cst_5 : f32 to vector<1x1x2x128xf32>
    %11 = arith.divf %9, %10 : vector<1x1x2x128xf32>
    %c0_6 = arith.constant 0 : index
    %c0_7 = arith.constant 0 : index
    %c0_8 = arith.constant 0 : index
    %c0_9 = arith.constant 0 : index
    %12 = vector.load %arg3[%c0_6, %c0_7, %c0_8, %c0_9] : memref<1x4x1x1xf32, #tpu.memory_space<vmem>>, vector<1x4x1x1xf32>
    %cst_10 = arith.constant 9.99999974E-6 : f32
    %13 = vector.broadcast %cst_10 : f32 to vector<1x1x2x128xf32>
    %14 = arith.addf %11, %13 : vector<1x1x2x128xf32>
    %15 = math.rsqrt %14 : vector<1x1x2x128xf32>
    %16 = vector.broadcast %15 : vector<1x1x2x128xf32> to vector<1x4x2x128xf32>
    %17 = arith.mulf %6, %16 : vector<1x4x2x128xf32>
    %18 = vector.broadcast %12 : vector<1x4x1x1xf32> to vector<1x4x2x128xf32>
    %19 = arith.mulf %17, %18 : vector<1x4x2x128xf32>
    %c0_11 = arith.constant 0 : index
    %c0_12 = arith.constant 0 : index
    %c0_13 = arith.constant 0 : index
    %c0_14 = arith.constant 0 : index
    %20 = vector.load %arg4[%c0_11, %c0_12, %c0_13, %c0_14] : memref<1x4x2x128xf32, #tpu.memory_space<vmem>>, vector<1x4x2x128xf32>
    tpu.vector_store %arg4[%c0_11, %c0_12, %c0_13, %c0_14], %19 {strides = array<i32>} : memref<1x4x2x128xf32, #tpu.memory_space<vmem>>, vector<1x4x2x128xf32>,
    return
  }
  func.func @transform_0(%arg0: i32, %arg1: i32) -> (i32, i32, i32, i32) {
    %c0_i32 = arith.constant 0 : i32
    %c0_i32_0 = arith.constant 0 : i32
    %c0_i32_1 = arith.constant 0 : i32
    return %arg0, %c0_i32, %arg1, %c0_i32_0 : i32, i32, i32, i32
  }
  func.func @transform_1(%arg0: i32, %arg1: i32) -> (i32, i32, i32, i32) {
    %c0_i32 = arith.constant 0 : i32
    %c0_i32_0 = arith.constant 0 : i32
    %c0_i32_1 = arith.constant 0 : i32
    %c0_i32_2 = arith.constant 0 : i32
    %c0_i32_3 = arith.constant 0 : i32
    return %c0_i32, %c0_i32_0, %c0_i32_1, %c0_i32_2 : i32, i32, i32, i32
  }
  func.func @transform_2(%arg0: i32, %arg1: i32) -> (i32, i32, i32, i32) {
    %c0_i32 = arith.constant 0 : i32
    %c0_i32_0 = arith.constant 0 : i32
    %c0_i32_1 = arith.constant 0 : i32
    return %arg0, %c0_i32, %arg1, %c0_i32_0 : i32, i32, i32, i32
  }
}

</mosaic_0001>

<bundles_post_ra>
// kernel: tpu_custom_call.1
= control target key start
LH: loop header
LB: loop body
LE: loop exit
PB: predicated region body
PF: predicated region fallthrough
CT: control target
= control target key end

     0   :  { %7 = vsyncpa [#allocation3], 0  ;;  %s757_s0 = inlined_call_operand.hbm [shape: f32[2,4,2,128], index: 0, kind: input, shape index: {}]   ;;  %s758_s1 = inlined_call_operand.vmem [shape: f32[1,4,1,1], index: 1, kind: input, shape index: {}]   ;;  %s759_s2 = inlined_call_operand.hbm [shape: f32[2,4,2,128], index: 2, kind: output, shape index: {}]  }
   0x1   :  { %9 = vsyncpa [#allocation3 + $0x1], 0 }
   0x2   :  { %10 = vsyncpa [#allocation4], 0 }
   0x3   :  { %12 = vsyncpa [#allocation4 + $0x1], 0  ;;  %s587_s9 = smov 0   ;;  %s589_s10 = smov 0  }
   0x4   :  { %s591_s11 = smov 0   ;;  %s593_s12 = smov 0  }
   0x5   :  { %s595_s13 = smov 0   ;;  %s597_s14 = smov 0  }
   0x6 LB: > { %s363_s15 = sadd.s32 4294967295, %s563_s14   ;;  %s364_s16 = sadd.s32 4294967294, %s563_s14   ;;  %s563_s14 = sphi %s597_s14, %s18_s14   ;;  %s559_s13 = sphi %s595_s13, %s770_s13   ;;  %s555_s12 = sphi %s593_s12, %s769_s12   ;;  %s551_s11 = sphi %s591_s11, %s768_s11   ;;  %s547_s10 = sphi %s589_s10, %s767_s10   ;;  %s543_s9 = sphi %s587_s9, %s766_s9  }
   0x7   : > { %s30_s17 = sadd.s32 1, %s559_s13  ;;  %s39_s18 = sadd.s32 1, %s551_s11 }
   0x8   : > { %p32_p0 = scmp.ge.s32.totalorder %s30_s17, 2  ;;  %p46_p1 = scmp.ne.s32.totalorder %s551_s11, %s547_s10 }
   0x9   : > { %p47_p2 = scmp.eq.s32.totalorder %s563_s14, 0  ;;  %p52_p3 = scmp.ne.s32.totalorder %s547_s10, %s543_s9 }
   0xa   : > { %s772_s17 = smov (%p32_p0, %s30_s17), 0  ;;  %p53_p5 = scmp.eq.s32.totalorder %s363_s15, 0 }
   0xb   : > { %p628_p4 = por %p47_p2, %p46_p1  ;;  %s34_s20 = ssub.s32 %s559_s13, %s772_s17 }
   0xc   : > { %p99_p6 = scmp.eq.s32.totalorder %s363_s15, 1  ;;  %p37_p7 = scmp.eq.s32.totalorder %s34_s20, 0 }
   0xd   : > { %p634_p8 = por %p53_p5, %p52_p3  ;;  %p105_p10 = scmp.eq.s32.totalorder %s364_s16, 1 }
   0xe   : > { %p638_p9 = por %p99_p6, %p46_p1  ;;  %p396_p13 = scmp.lt.s32.totalorder %s563_s14, 2 }
   0xf   : > { %s643_s23 = scalar_select %p37_p7, %s551_s11, %s39_s18  }
  0x10   : > { %p645_p11 = por %p105_p10, %p52_p3  ;;  %s128_s25 = sand.u32 1, %s551_s11  }
  0x11   : > { %s367_s26 = sshll.u32 %s128_s25, 3  ;;  %s382_s27 = sshll.u32 %s559_s13, 7 }
  0x12   : > { %s139_s30 = scalar_lea.hbm %s757_s0, %s382_s27  ;;  %s132_s3 = scalar_lea.vmem [#allocation2], %s367_s26 }
  0x13   : > { %s140_s4 = sshll.u32 %s132_s3, 4  ;;  %p658_p0 = pnand %p396_p13, %p628_p4  ;;  %s141_s4 = int_to_ptr.vmem [resolvable:$true] %s140_s4 }
  0x14   : > { %p370_p1 = scmp.ge.s32.totalorder %s563_s14, 1  ;;  %s129_s6 = scalar_lea.sflag [#allocation3], %s128_s25 }
  0x15   : > { %p457_p2 = pneg %p658_p0  ;;  %s468_s7 = scalar_lea.vmem %s141_s4, 128 }
  0x16   : > { %p469_p3 = scmp.ne.s32.totalorder %s141_s4, %s468_s7  ;;  %s565_s8 = smov [#allocation2]  }
  0x17   : > { %s473_s15 = sshll.u32 %s565_s8, 4  ;;  %s474_s15 = int_to_ptr.vmem [resolvable:$false] %s473_s15 }
  0x18   : > { %p471_p5 = pnand %p469_p3, %p457_p2  ;;  %s475_s16 = scalar_lea.vmem %s474_s15, 256 }
  0x19   : > { %p476_p7 = scmp.lt.s32.totalorder %s141_s4, %s474_s15  ;;  %p477_p10 = scmp.lt.s32.totalorder %s475_s16, %s468_s7 }
  0x1a   : > { %p472_p6 = pneg %p471_p5 }
  0x1b   : > { %p478_p12 = por %p477_p10, %p476_p7 }
  0x1d   : > { %p479_p4 = pnand %p478_p12, %p472_p6 }
  0x1f   : > { %482 = shalt.err (!%p479_p4)
}
  0x20   : > { %s566_s18 = smov 32   ;;  %s567_s19 = smov 2  }
  0x21   : > { %391 = dma.hbm_to_vmem [thread:$0]  (!%p658_p0), %s139_s30, 128, %s141_s4, %s129_s6, %s566_s18, %s566_s18, %s567_s19  }
  0x22   : > { %p148_p13 = scmp.lt.s32.totalorder %s563_s14, 3 }
  0x24   : > { %p149_p2 = pnand %p370_p1, %p148_p13 }
  0x25   : > { %s671_s20 = sand.u32 (!%p149_p2), 1, %s547_s10  }
  0x26   : > { %152 = sbr.rel (%p149_p2) target bundleno = 190 (0xbe), region = 28  ;;  %s371_s25 = sshll.u32 (!%p149_p2), %s671_s20, 3 }
  0x27   : > { %s155_s26 = scalar_lea.sflag (!%p149_p2), [#allocation3], %s671_s20  ;;  %s158_s27 = scalar_lea.vmem (!%p149_p2), [#allocation2], %s371_s25 }
  0x2b   : > { %534 = dma.done.wait (%p634_p8), %s155_s26, 128  }
  0x2c   : > { %536 = vsyncadd (%p634_p8), %s155_s26, 4294967168  ;;  %v568_v0 = vmov 0   ;;  %v375_v1 = vld [vmem:[%s758_s1 + $0x2] ss:$0 sm:$0xff]  ;;  %v373_v2 = vld [vmem:[%s758_s1] ss:$0 sm:$0xff] }
  0x2d   : > { %452 = vset.pattern.permute.xlu1 %v568_v0  ;;  %451 = vset.pattern.permute.xlu0 %v568_v0  ;;  %v376_v3 = vld [vmem:[%s758_s1 + $0x3] ss:$0 sm:$0xff]  ;;  %v374_v4 = vld [vmem:[%s758_s1 + $0x1] ss:$0 sm:$0xff]  ;;  %vm183_vm0 = vcmask 1041408   ;;  %s178_s7 = scalar_lea.vmem [#allocation5], %s371_s25 }
  0x2e   : > { %248 = vperm.xlu1 %452, %v375_v1   ;;  %240 = vperm.xlu0 %451, %v373_v2   ;;  %v179_v5 = vld [vmem:[%s158_s27] sm:$0x3]  ;;  %v180_v6 = vld [vmem:[%s158_s27 + $0x2] sm:$0x3]  ;;  %v181_v9 = vld [vmem:[%s158_s27 + $0x4] sm:$0x3] }
  0x2f   : > { %v184_v7 = vsel %vm183_vm0, %v179_v5, 0.0  ;;  %v185_v8 = vsel %vm183_vm0, %v180_v6, 0.0  ;;  %v187_v11 = vsel %vm183_vm0, %v181_v9, 0.0  ;;  %v182_v12 = vld [vmem:[%s158_s27 + $0x6] sm:$0x3]  ;;  %s278_s8 = sshll.u32 %s178_s7, 4  ;;  %s704_s8 = int_to_ptr.vmem [resolvable:$true] %s278_s8 }
  0x30   : > { %v186_v10 = vadd.f32 %v185_v8, %v184_v7  ;;  %v189_v14 = vsel %vm183_vm0, %v182_v12, 0.0  ;;  %s383_s15 = sshll.u32 %s555_s12, 7  ;;  %s264_s25 = scalar_lea.sflag [#allocation4], %s671_s20 }
  0x31   : > { %s709_s19 = scalar_lea.hbm %s759_s2, %s383_s15  ;;  %s483_s12 = scalar_lea.vmem %s704_s8, 128 }
  0x32   : > { %252 = vperm.xlu1 %452, %v376_v3   ;;  %244 = vperm.xlu0 %451, %v374_v4   ;;  %v188_v13 = vadd.f32 %v187_v11, %v186_v10  ;;  %p484_p8 = scmp.ne.s32.totalorder %s704_s8, %s483_s12  ;;  %s569_s26 = smov [#allocation5]  }
  0x33   : > { %s487_s27 = sshll.u32 %s569_s26, 4  ;;  %s488_s27 = int_to_ptr.vmem [resolvable:$false] %s487_s27 }
  0x34   : > { %v190_v15 = vadd.f32 %v189_v14, %v188_v13  ;;  %p485_p12 = pnand %p484_p8, %p638_p9  ;;  %s489_s28 = scalar_lea.vmem %s488_s27, 256 }
  0x35   : > { %p490_p1 = scmp.lt.s32.totalorder %s704_s8, %s488_s27  ;;  %p491_p3 = scmp.lt.s32.totalorder %s489_s28, %s483_s12 }
  0x36   : > { %v192_v16 = vmul.f32 0.25, %v190_v15  ;;  %p486_p0 = pneg %p485_p12 }
  0x37   : > { %p492_p5 = por %p491_p3, %p490_p1 }
  0x38   : > { %v193_v17 = vsub.f32 %v179_v5, %v192_v16  ;;  %v194_v18 = vsub.f32 %v180_v6, %v192_v16  ;;  %v195_v19 = vsub.f32 %v181_v9, %v192_v16  ;;  %v196_v22 = vsub.f32 %v182_v12, %v192_v16 }
  0x39   : > { %p493_p6 = pnand %p492_p5, %p486_p0 }
  0x3a   : > { %v197_v20 = vmul.f32 %v193_v17, %v193_v17  ;;  %v198_v21 = vmul.f32 %v194_v18, %v194_v18  ;;  %v199_v23 = vmul.f32 %v195_v19, %v195_v19  ;;  %v200_v27 = vmul.f32 %v196_v22, %v196_v22 }
  0x3c   : > { %v201_v24 = vsel %vm183_vm0, %v197_v20, 0.0  ;;  %v202_v25 = vsel %vm183_vm0, %v198_v21, 0.0  ;;  %v204_v28 = vsel %vm183_vm0, %v199_v23, 0.0  ;;  %v206_v30 = vsel %vm183_vm0, %v200_v27, 0.0 }
  0x3d   : > { %v203_v26 = vadd.f32 %v202_v25, %v201_v24 }
  0x3f   : > { %v205_v29 = vadd.f32 %v204_v28, %v203_v26 }
  0x41   : > { %v207_v31 = vadd.f32 %v206_v30, %v205_v29 }
  0x43   : > { %v208_v32 = vmul.f32 0.25, %v207_v31 }
  0x45   : > { %v213_v33 = vadd.f32 1e-05, %v208_v32 }
  0x47   : > { %453 = vrsqrt.f32 %v213_v33 }
  0x54   : > { %v454_v34 = vpop.eup %453 }
  0x55   : > { %v217_v35 = vmul.f32 %v454_v34, %v195_v19  ;;  %v215_v36 = vmul.f32 %v454_v34, %v193_v17  ;;  %v218_v41 = vmul.f32 %v454_v34, %v196_v22  ;;  %v216_v42 = vmul.f32 %v454_v34, %v194_v18 }
  0xa9   : > { %v249_v37 = vpop.permute.xlu1 %248  ;;  %v241_v38 = vpop.permute.xlu0 %240 }
  0xaa   : > { %v257_v39 = vmul.f32 %v249_v37, %v217_v35  ;;  %v255_v40 = vmul.f32 %v241_v38, %v215_v36 }
  0xac   : > { %261 = vst [vmem:[%s178_s7 + $0x4] sm:$0x3] %v257_v39  ;;  %259 = vst [vmem:[%s178_s7] sm:$0x3] %v255_v40 }
  0xad   : > { %v253_v43 = vpop.permute.xlu1 %252  ;;  %v245_v44 = vpop.permute.xlu0 %244 }
  0xae   : > { %v258_v45 = vmul.f32 %v253_v43, %v218_v41  ;;  %v256_v46 = vmul.f32 %v245_v44, %v216_v42 }
  0xb0   : > { %262 = vst [vmem:[%s178_s7 + $0x6] sm:$0x3] %v258_v45  ;;  %260 = vst [vmem:[%s178_s7 + $0x2] sm:$0x3] %v256_v46 }
  0xb1   : > { %496 = shalt.err (!%p493_p6)
}
  0xb2   : > { %s497_s29 = scalar_lea.hbm %s709_s19, 128  ;;  %s501_s4 = scalar_lea.hbm %s759_s2, 256 }
  0xb3   : > { %p498_p7 = scmp.ne.s32.totalorder %s709_s19, %s497_s29  ;;  %p502_p13 = scmp.lt.s32.totalorder %s709_s19, %s759_s2 }
  0xb4   : > { %p503_p2 = scmp.lt.s32.totalorder %s501_s4, %s497_s29 }
  0xb5   : > { %p499_p10 = pnand %p498_p7, %p638_p9 }
  0xb6   : > { %p504_p8 = por %p503_p2, %p502_p13 }
  0xb7   : > { %p500_p4 = pneg %p499_p10 }
  0xb9   : > { %p505_p12 = pnand %p504_p8, %p500_p4 }
  0xbb   : > { %508 = shalt.err (!%p505_p12)
}
  0xbc   : > { %s570_s21 = smov 32   ;;  %s571_s7 = smov 2  }
  0xbd   : > { %386 = dma.vmem_to_hbm [thread:$0]  (%p638_p9), %s704_s8, 128, %s709_s19, %s264_s25, %s570_s21, %s570_s21, %s571_s7  }
  0xbe PF: > { %s293_s15 = sand.u32 1, %s543_s9   ;;  %p765_p0 = scmp.ge.s32.totalorder %s563_s14, 2 }
  0xbf   : > { %s294_s16 = scalar_lea.sflag [#allocation4], %s293_s15 }
  0xc0   : > { %p393_p1 = pnand %p765_p0, %p645_p11 }
  0xc2   : > { %p394_p3 = pneg %p393_p1 }
  0xc4   : > { %538 = dma.done.wait (%p394_p3), %s294_s16, 128  }
  0xc5   : > { %540 = vsyncadd (%p394_p3), %s294_s16, 4294967168  ;;  %s18_s14 = sadd.s32 1, %s563_s14   ;;  %s766_s9 = smov %s547_s10 }
  0xc6   : > { %p15_p5 = scmp.ge.s32.totalorder %s18_s14, 4   ;;  %s767_s10 = smov %s551_s11 }
  0xc7   : > { %s768_s11 = smov %s643_s23  ;;  %s769_s12 = smov %s559_s13 }
  0xc8   : > { %s770_s13 = smov %s772_s17  ;;  %17 = sbr.rel (!%p15_p5) target bundleno = 6 (0x6), region = 73 }
  0xcd   :  { %299 = vsyncpa [#allocation3], 1 }
  0xce   :  { %301 = vsyncpa [#allocation3 + $0x1], 1 }
  0xcf   :  { %302 = vsyncpa [#allocation4], 1 }
  0xd0   :  { %304 = vsyncpa [#allocation4 + $0x1], 1 }

</bundles_post_ra>
